<compile_context>
chip_gen: v7x
topology: tpu7x:2x2x1
jax: 0.10.0
libtpu: 0.0.40
codegen_flags: <defaults>
</compile_context>

<pallas_src>
import jax
import jax.numpy as jnp
import numpy as np
from jax.experimental import pallas as pl
from jax.experimental.pallas import tpu as pltpu

_EPS = 1e-12  # torch.nn.functional.normalize default eps (denominator clamp)

# Flipped to False at runtime if pl.Buffered(1) is rejected by the installed JAX/Mosaic.
_SINGLE_BUFFER_WEIGHTS = True


def _cdiv(a, b):
    return (a + b - 1) // b


def _round_up(a, m):
    return _cdiv(a, m) * m


# ---------------------------------------------------------------------------
# Pallas kernels
# ---------------------------------------------------------------------------
def _powder_prompt_kernel(xq_ref, w1t_ref, w2t_ref, p_ref, pout_ref):
    """P_[b, :] = aq_k[b, :] @ p_flat with
         aq_k[b,k] = (x_b . (A_k*n_K_k)) / max(||x_b*A_k||, eps)."""
    xq = xq_ref[...]                       # (tb, D)       f32
    w1t = w1t_ref[...]                     # (D, Kp_pad)   bf16 = (A * normalize(K)).T
    w2t = w2t_ref[...]                     # (D, Kp_pad)   bf16 = (A * A).T
    p_flat = p_ref[...]                    # (Kp_pad, L*E) bf16

    # bf16 MXU operands, f32 accumulation.  x*x is squared in f32 then cast.
    xq_b = xq.astype(w1t.dtype)
    xsq_b = (xq * xq).astype(w2t.dtype)
    num = jnp.dot(xq_b, w1t, preferred_element_type=jnp.float32)      # (tb, Kp_pad)
    den = jnp.dot(xsq_b, w2t, preferred_element_type=jnp.float32)     # (tb, Kp_pad)

    # sqrt(max(den, eps^2)) == max(sqrt(den), eps)  (sqrt monotone) -> one EUP rsqrt.
    aq_k = num * jax.lax.rsqrt(jnp.maximum(den, _EPS * _EPS))          # (tb, Kp_pad)

    pout_ref[...] = jnp.dot(aq_k.astype(p_flat.dtype), p_flat,
                            preferred_element_type=jnp.float32).astype(pout_ref.dtype)


def _ortho_penalty3_kernel(k_ref, a_ref, p_ref, out_ref):
    """sum of ortho_penalty(t) = mean((t @ t.T - I)**2) over three parameter matrices,
       without materializing I:  mean((G-I)^2) = (sum(G*G) - 2*trace(G) + n)/n^2,
       trace(t@t.T) = sum(t*t).  Gram products run with bf16 operands / f32 accumulate
       (regularizer scalar; precision is ample)."""
    def pen(t):
        n = t.shape[0]
        tb = t.astype(jnp.bfloat16)
        g = jax.lax.dot_general(tb, tb, (((1,), (1,)), ((), ())),
                                preferred_element_type=jnp.float32)    # t @ t.T
        return (jnp.sum(g * g) - 2.0 * jnp.sum(t * t) + float(n)) / float(n * n)

    out_ref[0, 0] = pen(k_ref[...]) + pen(a_ref[...]) + pen(p_ref[...])


# ---------------------------------------------------------------------------
# Wrappers around pallas_call
# ---------------------------------------------------------------------------
def prepare_powder_weights(A, K, p, *, compute_dtype=jnp.bfloat16, kp_pad_multiple=128):
    """Parameter-only preprocessing (cache per task/layer; depends only on parameters).
       Returns (w1t, w2t, p_flat) with Kp zero-padded to a multiple of `kp_pad_multiple`."""
    Kp, L, E = p.shape
    inv_k_norm = 1.0 / jnp.maximum(
        jnp.sqrt(jnp.sum(K * K, axis=1, keepdims=True)), _EPS)
    w1 = A * (K * inv_k_norm)                      # (Kp, D)
    w2 = A * A                                     # (Kp, D)
    p_flat = p.reshape(Kp, L * E)

    kp_pad = _round_up(max(Kp, 1), kp_pad_multiple)
    if kp_pad != Kp:
        pad = kp_pad - Kp
        w1 = jnp.pad(w1, ((0, pad), (0, 0)))       # zero columns -> num = 0 -> aq_k = 0
        w2 = jnp.pad(w2, ((0, pad), (0, 0)))
        p_flat = jnp.pad(p_flat, ((0, pad), (0, 0)))

    return (w1.T.astype(compute_dtype),
            w2.T.astype(compute_dtype),
            p_flat.astype(compute_dtype))


def powder_prompt_core(x_querry, w1t, w2t, p_flat, L, E, *,
                       block_b=256, out_dtype=jnp.bfloat16):
    """Returns P_ with shape (B, L, E) in `out_dtype` (bf16 to halve HBM writeback)."""
    global _SINGLE_BUFFER_WEIGHTS
    B, D = x_querry.shape
    Kp_pad, LE = p_flat.shape
    assert LE == L * E

    # Batch tile: multiple of 8, and >= 2 grid steps once B > 8 so v7x's two
    # TensorCores both get work under dimension_semantics=("parallel",).
    if B <= 8:
        tb = B                       # full-extent block (allowed; no padding at tiny B)
    else:
        tb = max(8, min(block_b, _round_up(_cdiv(B, 2), 8)))
    grid = (_cdiv(B, tb),)

    def _run(single_buffer_weights):
        wkw = {"pipeline_mode": pl.Buffered(1)} if single_buffer_weights else {}
        call = pl.pallas_call(
            _powder_prompt_kernel,
            out_shape=jax.ShapeDtypeStruct((B, LE), out_dtype),
            grid_spec=pltpu.PrefetchScalarGridSpec(
                num_scalar_prefetch=0,
                grid=grid,
                in_specs=[
                    pl.BlockSpec((tb, D), lambda i: (i, 0)),            # x: tiled batch
                    pl.BlockSpec((D, Kp_pad), lambda i: (0, 0), **wkw),  # W1ᵀ: resident
                    pl.BlockSpec((D, Kp_pad), lambda i: (0, 0), **wkw),  # W2ᵀ: resident
                    pl.BlockSpec((Kp_pad, LE), lambda i: (0, 0), **wkw),  # p_flat: resident
                ],
                out_specs=pl.BlockSpec((tb, LE), lambda i: (i, 0)),     # lane-dense out
            ),
            compiler_params=pltpu.CompilerParams(
                dimension_semantics=("parallel",),
                vmem_limit_bytes=48 * 1024 * 1024,   # headroom for tb=256 on all gens
            ),
        )
        return call(x_querry, w1t, w2t, p_flat)

    if _SINGLE_BUFFER_WEIGHTS:
        try:
            P_flat = _run(True)
        except Exception:
            _SINGLE_BUFFER_WEIGHTS = False
            P_flat = _run(False)
    else:
        P_flat = _run(False)
    return P_flat.reshape(B, L, E)


def ortho_penalty_sum(K, A, P2d):
    """ortho_penalty(K) + ortho_penalty(A) + ortho_penalty(P2d) in one launch."""
    vmem = pl.BlockSpec(memory_space=pltpu.MemorySpace.VMEM)
    smem = pl.BlockSpec(memory_space=pltpu.MemorySpace.SMEM)
    out = pl.pallas_call(
        _ortho_penalty3_kernel,
        out_shape=jax.ShapeDtypeStruct((1, 1), jnp.float32),
        in_specs=[vmem, vmem, vmem],
        out_specs=smem,
    )(K, A, P2d)
    return out[0, 0]


# ---------------------------------------------------------------------------
# Parameter init (deterministic, mimics gram_schmidt at task_count == 0:
# rows [0, pt) are random orthonormal vectors, rows [pt, pool) are zero).
# ---------------------------------------------------------------------------
def _gs_init(key, pool, dim, pt):
    g = jax.random.normal(key, (dim, pt), dtype=jnp.float32)
    q, _ = jnp.linalg.qr(g)                     # orthonormal columns (dim, pt)
    rows = q.T                                  # (pt, dim)
    full = jnp.zeros((pool, dim), dtype=jnp.float32)
    return full.at[:pt].set(rows)
# TODO(synk): the PyTorch gram_schmidt uses host-side rejection-sampling with torch.randn;
# replaced by an equivalent deterministic QR-based orthonormal init (same span/orthonormality).


class PowderPromptPallas:
    def __init__(self, emb_d, n_tasks, prompt_param, key_dim=768, seed=0):
        self.task_count = 0
        self.emb_d = emb_d
        self.key_d = key_dim
        self.n_tasks = n_tasks
        self.e_pool_size = int(prompt_param[0])
        self.e_p_length = int(prompt_param[1])
        self.e_layers = [0, 1, 2, 3, 4]
        self.ortho_mu = prompt_param[2]

        pt = self.e_pool_size // self.n_tasks
        key = jax.random.PRNGKey(seed)
        self.params = {}
        for e in self.e_layers:
            key, k1, k2, k3 = jax.random.split(key, 4)
            p = _gs_init(k1, self.e_pool_size, self.e_p_length * emb_d, pt)
            p = p.reshape(self.e_pool_size, self.e_p_length, emb_d)
            k = _gs_init(k2, self.e_pool_size, self.key_d, pt)
            a = _gs_init(k3, self.e_pool_size, self.key_d, pt)
            self.params[f'e_p_{e}'] = p
            self.params[f'e_k_{e}'] = k
            self.params[f'e_a_{e}'] = a

        # Cache of preprocessed (K, A, p, w1t, w2t, p_flat) per (layer, train, task_count).
        # NOTE: clear this cache whenever self.params are updated (e.g. an optimizer step).
        self._weight_cache = {}

    def _get_weights(self, l, train):
        cache_key = (l, bool(train), self.task_count)
        if cache_key not in self._weight_cache:
            K = self.params[f'e_k_{l}']
            A = self.params[f'e_a_{l}']
            p = self.params[f'e_p_{l}']
            pt = int(self.e_pool_size / self.n_tasks)
            s = int(self.task_count * pt)
            f = int((self.task_count + 1) * pt)
            if train:
                K, A, p = K[s:f], A[s:f], p[s:f]
            else:
                K, A, p = K[0:f], A[0:f], p[0:f]
            w1t, w2t, p_flat = prepare_powder_weights(A, K, p)
            self._weight_cache[cache_key] = (K, A, p, w1t, w2t, p_flat)
        return self._weight_cache[cache_key]

    def forward(self, x_querry, l, x_block, train=False, task_id=None):
        loss = jnp.float32(0.0)
        p_return = None
        if l in self.e_layers:
            K, A, p, w1t, w2t, p_flat = self._get_weights(l, train)

            P_ = powder_prompt_core(x_querry, w1t, w2t, p_flat,
                                    self.e_p_length, self.emb_d)
            i = self.e_p_length // 2
            Ek = P_[:, :i, :]
            Ev = P_[:, i:, :]
            p_return = [Ek, Ev]

            if train and self.ortho_mu > 0:
                loss = ortho_penalty_sum(K, A, p.reshape(p.shape[0], -1)) * self.ortho_mu
        return p_return, loss, x_block


# ---------------------------------------------------------------------------
if __name__ == "__main__":
    # Small shapes consistent with the module (emb_d == key_dim query features).
    emb_d, key_d = 32, 32
    n_tasks = 2
    e_pool_size, e_p_length, ortho_mu = 8, 8, 0.1
    B = 2

    model = PowderPromptPallas(
        emb_d, n_tasks, (e_pool_size, e_p_length, ortho_mu), key_dim=key_d, seed=0)

    key = jax.random.PRNGKey(0)
    kx, kb = jax.random.split(key)
    x_querry = jax.random.normal(kx, (B, key_d), dtype=jnp.float32)
    x_block = jax.random.normal(kb, (B, 5, emb_d), dtype=jnp.float32)

    # eval-mode forward (loss == 0, uses K/A/p[0:f])
    p_ret, loss, xb = model.forward(x_querry, l=0, x_block=x_block, train=False)
    Ek, Ev = p_ret
    jax.block_until_ready((Ek, Ev, loss, xb))

    # Pure-JAX f32 reference (matches the torch einsum formulation); lenient tolerance
    # because the kernel runs the MXU in bf16 (f32 accumulation) and emits a bf16 slab.
    f_idx = e_pool_size // n_tasks
    K0 = model.params['e_k_0'][:f_idx]
    A0 = model.params['e_a_0'][:f_idx]
    p0 = model.params['e_p_0'][:f_idx]
    aq = jnp.einsum('bd,kd->bkd', x_querry, A0)
    n_K = K0 / jnp.maximum(jnp.linalg.norm(K0, axis=1, keepdims=True), _EPS)
    q = aq / jnp.maximum(jnp.linalg.norm(aq, axis=2, keepdims=True), _EPS)
    aq_k = jnp.einsum('bkd,kd->bk', q, n_K)
    P_ref = jnp.einsum('bk,kld->bld', aq_k, p0)
    P_got = jnp.concatenate([Ek, Ev], axis=1).astype(jnp.float32)
    np.testing.assert_allclose(np.asarray(P_got), np.asarray(P_ref),
                               rtol=5e-2, atol=1e-2)

    # train-mode forward (uses K/A/p[s:f], adds fused ortho penalty loss)
    p_ret_t, loss_t, _ = model.forward(x_querry, l=0, x_block=x_block, train=True)
    jax.block_until_ready((p_ret_t[0], p_ret_t[1], loss_t))

    assert Ek.shape == (B, e_p_length // 2, emb_d)
    assert Ev.shape == (B, e_p_length // 2, emb_d)
    assert xb.shape == x_block.shape
    print("KERNEL_OK")
</pallas_src>

<mosaic_0001>
module attributes {stable_mosaic.version = 11 : i64} {
  func.func @_powder_prompt_kernel(%arg0: i32, %arg1: memref<2x32xf32, #tpu.memory_space<vmem>>, %arg2: memref<32x128xbf16, #tpu.memory_space<vmem>>, %arg3: memref<32x128xbf16, #tpu.memory_space<vmem>>, %arg4: memref<128x256xbf16, #tpu.memory_space<vmem>>, %arg5: memref<2x256xbf16, #tpu.memory_space<vmem>>) attributes {dimension_semantics = [#tpu.dimension_semantics<parallel>], iteration_bounds = array<i64: 1>, scalar_prefetch = 0 : i64, scratch_operands = 0 : i64, tpu.core_type = #tpu.core_type<tc>, window_params = [{transform_indices = @transform_0, window_bounds = array<i64: 2, 32>}, {pipeline_mode = #tpu.pipeline_mode<synchronous>, transform_indices = @transform_1, window_bounds = array<i64: 32, 128>}, {pipeline_mode = #tpu.pipeline_mode<synchronous>, transform_indices = @transform_2, window_bounds = array<i64: 32, 128>}, {pipeline_mode = #tpu.pipeline_mode<synchronous>, transform_indices = @transform_3, window_bounds = array<i64: 128, 256>}, {transform_indices = @transform_4, window_bounds = array<i64: 2, 256>}]} {
    %c0 = arith.constant 0 : index
    %c0_0 = arith.constant 0 : index
    %0 = vector.load %arg1[%c0, %c0_0] : memref<2x32xf32, #tpu.memory_space<vmem>>, vector<2x32xf32>
    %c0_1 = arith.constant 0 : index
    %c0_2 = arith.constant 0 : index
    %1 = vector.load %arg2[%c0_1, %c0_2] : memref<32x128xbf16, #tpu.memory_space<vmem>>, vector<32x128xbf16>
    %c0_3 = arith.constant 0 : index
    %c0_4 = arith.constant 0 : index
    %2 = vector.load %arg3[%c0_3, %c0_4] : memref<32x128xbf16, #tpu.memory_space<vmem>>, vector<32x128xbf16>
    %c0_5 = arith.constant 0 : index
    %c0_6 = arith.constant 0 : index
    %3 = vector.load %arg4[%c0_5, %c0_6] : memref<128x256xbf16, #tpu.memory_space<vmem>>, vector<128x256xbf16>
    %4 = arith.truncf %0 : vector<2x32xf32> to vector<2x32xbf16>
    %5 = arith.mulf %0, %0 : vector<2x32xf32>
    %6 = arith.truncf %5 : vector<2x32xf32> to vector<2x32xbf16>
    %cst = arith.constant dense<0.000000e+00> : vector<2x128xf32>
    %7 = tpu.matmul %4, %1, %cst {dimension_numbers = #tpu.dot_dimension_numbers<[1], [0], [0], [1], [0, 0, 1, 1], [], []>} : vector<2x32xbf16>, vector<32x128xbf16>, vector<2x128xf32> -> vector<2x128xf32>
    %cst_7 = arith.constant dense<0.000000e+00> : vector<2x128xf32>
    %8 = tpu.matmul %6, %2, %cst_7 {dimension_numbers = #tpu.dot_dimension_numbers<[1], [0], [0], [1], [0, 0, 1, 1], [], []>} : vector<2x32xbf16>, vector<32x128xbf16>, vector<2x128xf32> -> vector<2x128xf32>
    %cst_8 = arith.constant 1.000000e-24 : f32
    %9 = vector.broadcast %cst_8 : f32 to vector<2x128xf32>
    %10 = arith.maximumf %8, %9 : vector<2x128xf32>
    %11 = math.rsqrt %10 : vector<2x128xf32>
    %12 = arith.mulf %7, %11 : vector<2x128xf32>
    %13 = arith.truncf %12 : vector<2x128xf32> to vector<2x128xbf16>
    %cst_9 = arith.constant dense<0.000000e+00> : vector<2x256xf32>
    %14 = tpu.matmul %13, %3, %cst_9 {dimension_numbers = #tpu.dot_dimension_numbers<[1], [0], [0], [1], [0, 0, 1, 1], [], []>} : vector<2x128xbf16>, vector<128x256xbf16>, vector<2x256xf32> -> vector<2x256xf32>
    %15 = arith.truncf %14 : vector<2x256xf32> to vector<2x256xbf16>
    %c0_10 = arith.constant 0 : index
    %c0_11 = arith.constant 0 : index
    %16 = vector.load %arg5[%c0_10, %c0_11] : memref<2x256xbf16, #tpu.memory_space<vmem>>, vector<2x256xbf16>
    tpu.vector_store %arg5[%c0_10, %c0_11], %15 {strides = array<i32>} : memref<2x256xbf16, #tpu.memory_space<vmem>>, vector<2x256xbf16>,
    return
  }
  func.func @transform_0(%arg0: i32) -> (i32, i32) {
    %c0_i32 = arith.constant 0 : i32
    %c0_i32_0 = arith.constant 0 : i32
    return %arg0, %c0_i32 : i32, i32
  }
  func.func @transform_1(%arg0: i32) -> (i32, i32) {
    %c0_i32 = arith.constant 0 : i32
    %c0_i32_0 = arith.constant 0 : i32
    %c0_i32_1 = arith.constant 0 : i32
    return %c0_i32, %c0_i32_0 : i32, i32
  }
  func.func @transform_2(%arg0: i32) -> (i32, i32) {
    %c0_i32 = arith.constant 0 : i32
    %c0_i32_0 = arith.constant 0 : i32
    %c0_i32_1 = arith.constant 0 : i32
    return %c0_i32, %c0_i32_0 : i32, i32
  }
  func.func @transform_3(%arg0: i32) -> (i32, i32) {
    %c0_i32 = arith.constant 0 : i32
    %c0_i32_0 = arith.constant 0 : i32
    %c0_i32_1 = arith.constant 0 : i32
    return %c0_i32, %c0_i32_0 : i32, i32
  }
  func.func @transform_4(%arg0: i32) -> (i32, i32) {
    %c0_i32 = arith.constant 0 : i32
    %c0_i32_0 = arith.constant 0 : i32
    return %arg0, %c0_i32 : i32, i32
  }
}

module attributes {stable_mosaic.version = 11 : i64} {
  func.func @_powder_prompt_kernel(%arg0: i32, %arg1: memref<2x32xf32, #tpu.memory_space<vmem>>, %arg2: memref<32x128xbf16, #tpu.memory_space<vmem>>, %arg3: memref<32x128xbf16, #tpu.memory_space<vmem>>, %arg4: memref<128x256xbf16, #tpu.memory_space<vmem>>, %arg5: memref<2x256xbf16, #tpu.memory_space<vmem>>) attributes {dimension_semantics = [#tpu.dimension_semantics<parallel>], iteration_bounds = array<i64: 1>, scalar_prefetch = 0 : i64, scratch_operands = 0 : i64, tpu.core_type = #tpu.core_type<tc>, window_params = [{transform_indices = @transform_0, window_bounds = array<i64: 2, 32>}, {pipeline_mode = #tpu.pipeline_mode<synchronous>, transform_indices = @transform_1, window_bounds = array<i64: 32, 128>}, {pipeline_mode = #tpu.pipeline_mode<synchronous>, transform_indices = @transform_2, window_bounds = array<i64: 32, 128>}, {pipeline_mode = #tpu.pipeline_mode<synchronous>, transform_indices = @transform_3, window_bounds = array<i64: 128, 256>}, {transform_indices = @transform_4, window_bounds = array<i64: 2, 256>}]} {
    %c0 = arith.constant 0 : index
    %c0_0 = arith.constant 0 : index
    %0 = vector.load %arg1[%c0, %c0_0] : memref<2x32xf32, #tpu.memory_space<vmem>>, vector<2x32xf32>
    %c0_1 = arith.constant 0 : index
    %c0_2 = arith.constant 0 : index
    %1 = vector.load %arg2[%c0_1, %c0_2] : memref<32x128xbf16, #tpu.memory_space<vmem>>, vector<32x128xbf16>
    %c0_3 = arith.constant 0 : index
    %c0_4 = arith.constant 0 : index
    %2 = vector.load %arg3[%c0_3, %c0_4] : memref<32x128xbf16, #tpu.memory_space<vmem>>, vector<32x128xbf16>
    %c0_5 = arith.constant 0 : index
    %c0_6 = arith.constant 0 : index
    %3 = vector.load %arg4[%c0_5, %c0_6] : memref<128x256xbf16, #tpu.memory_space<vmem>>, vector<128x256xbf16>
    %4 = arith.truncf %0 : vector<2x32xf32> to vector<2x32xbf16>
    %5 = arith.mulf %0, %0 : vector<2x32xf32>
    %6 = arith.truncf %5 : vector<2x32xf32> to vector<2x32xbf16>
    %cst = arith.constant dense<0.000000e+00> : vector<2x128xf32>
    %7 = tpu.matmul %4, %1, %cst {dimension_numbers = #tpu.dot_dimension_numbers<[1], [0], [0], [1], [0, 0, 1, 1], [], []>} : vector<2x32xbf16>, vector<32x128xbf16>, vector<2x128xf32> -> vector<2x128xf32>
    %cst_7 = arith.constant dense<0.000000e+00> : vector<2x128xf32>
    %8 = tpu.matmul %6, %2, %cst_7 {dimension_numbers = #tpu.dot_dimension_numbers<[1], [0], [0], [1], [0, 0, 1, 1], [], []>} : vector<2x32xbf16>, vector<32x128xbf16>, vector<2x128xf32> -> vector<2x128xf32>
    %cst_8 = arith.constant 1.000000e-24 : f32
    %9 = vector.broadcast %cst_8 : f32 to vector<2x128xf32>
    %10 = arith.maximumf %8, %9 : vector<2x128xf32>
    %11 = math.rsqrt %10 : vector<2x128xf32>
    %12 = arith.mulf %7, %11 : vector<2x128xf32>
    %13 = arith.truncf %12 : vector<2x128xf32> to vector<2x128xbf16>
    %cst_9 = arith.constant dense<0.000000e+00> : vector<2x256xf32>
    %14 = tpu.matmul %13, %3, %cst_9 {dimension_numbers = #tpu.dot_dimension_numbers<[1], [0], [0], [1], [0, 0, 1, 1], [], []>} : vector<2x128xbf16>, vector<128x256xbf16>, vector<2x256xf32> -> vector<2x256xf32>
    %15 = arith.truncf %14 : vector<2x256xf32> to vector<2x256xbf16>
    %c0_10 = arith.constant 0 : index
    %c0_11 = arith.constant 0 : index
    %16 = vector.load %arg5[%c0_10, %c0_11] : memref<2x256xbf16, #tpu.memory_space<vmem>>, vector<2x256xbf16>
    tpu.vector_store %arg5[%c0_10, %c0_11], %15 {strides = array<i32>} : memref<2x256xbf16, #tpu.memory_space<vmem>>, vector<2x256xbf16>,
    return
  }
  func.func @transform_0(%arg0: i32) -> (i32, i32) {
    %c0_i32 = arith.constant 0 : i32
    %c0_i32_0 = arith.constant 0 : i32
    return %arg0, %c0_i32 : i32, i32
  }
  func.func @transform_1(%arg0: i32) -> (i32, i32) {
    %c0_i32 = arith.constant 0 : i32
    %c0_i32_0 = arith.constant 0 : i32
    %c0_i32_1 = arith.constant 0 : i32
    return %c0_i32, %c0_i32_0 : i32, i32
  }
  func.func @transform_2(%arg0: i32) -> (i32, i32) {
    %c0_i32 = arith.constant 0 : i32
    %c0_i32_0 = arith.constant 0 : i32
    %c0_i32_1 = arith.constant 0 : i32
    return %c0_i32, %c0_i32_0 : i32, i32
  }
  func.func @transform_3(%arg0: i32) -> (i32, i32) {
    %c0_i32 = arith.constant 0 : i32
    %c0_i32_0 = arith.constant 0 : i32
    %c0_i32_1 = arith.constant 0 : i32
    return %c0_i32, %c0_i32_0 : i32, i32
  }
  func.func @transform_4(%arg0: i32) -> (i32, i32) {
    %c0_i32 = arith.constant 0 : i32
    %c0_i32_0 = arith.constant 0 : i32
    return %arg0, %c0_i32 : i32, i32
  }
}

</mosaic_0001>

<bundles_post_ra>
// kernel: tpu_custom_call.1
= control target key start
LH: loop header
LB: loop body
LE: loop exit
PB: predicated region body
PF: predicated region fallthrough
CT: control target
= control target key end

     0   :  { %9 = vsyncpa [#allocation3], 0  ;;  %s689_s0 = inlined_call_operand.hbm [shape: f32[2,32], index: 0, kind: input, shape index: {}]   ;;  %s690_s1 = inlined_call_operand.hbm [shape: bf16[32,128], index: 1, kind: input, shape index: {}]   ;;  %s691_s2 = inlined_call_operand.hbm [shape: bf16[32,128], index: 2, kind: input, shape index: {}]   ;;  %s692_s3 = inlined_call_operand.hbm [shape: bf16[128,256], index: 3, kind: input, shape index: {}]   ;;  %s693_s4 = inlined_call_operand.hbm [shape: bf16[2,256], index: 4, kind: output, shape index: {}]  }
   0x1   :  { %10 = vsyncpa [#allocation6], 0 }
   0x2   :  { %11 = vsyncpa [#allocation9], 0 }
   0x3   :  { %12 = vsyncpa [#allocation4], 0  ;;  %s581_s15 = smov [#allocation5]   ;;  %s463_s19 = scalar_lea.hbm %s690_s1, 256 }
   0x4   :  { %s28_s16 = sshll.u32 %s581_s15, 4  ;;  %p464_p0 = scmp.ne.s32.totalorder %s690_s1, %s463_s19  ;;  %s29_s16 = int_to_ptr.vmem [resolvable:$true] %s28_s16 }
   0x5   :  { %p467_p1 = scmp.lt.u32.totalorder %s463_s19, %s690_s1 }
   0x7   :  { %p469_p2 = pnand %p467_p1, %p464_p0 }
   0x9   :  { %472 = shalt.err (!%p469_p2)
}
   0xa   :  { %s473_s24 = scalar_lea.vmem %s29_s16, 256  ;;  %p478_p4 = scmp.lt.s32.totalorder %s29_s16, %s29_s16 }
   0xb   :  { %p474_p3 = scmp.ne.s32.totalorder %s29_s16, %s473_s24  ;;  %p479_p5 = scmp.lt.s32.totalorder %s473_s24, %s473_s24 }
   0xd   :  { %p480_p6 = por %p479_p5, %p478_p4 }
   0xf   :  { %p481_p7 = pnand %p480_p6, %p474_p3 }
  0x11   :  { %484 = shalt.err (!%p481_p7)
}
  0x12   :  { %s582_s25 = smov 64   ;;  %s583_s26 = smov 4  }
  0x13   :  { %34 = dma.hbm_to_vmem [thread:$0]  %s690_s1, 256, %s29_s16, [#allocation6], %s582_s25, %s582_s25, %s583_s26  }
  0x14   :  { %s584_s29 = smov [#allocation2]   ;;  %s585_s5 = smov [#allocation7]  }
  0x15   :  { %s19_s30 = sshll.u32 %s584_s29, 4  ;;  %s40_s6 = sshll.u32 %s585_s5, 4  ;;  %s20_s30 = int_to_ptr.vmem [resolvable:$true] %s19_s30  ;;  %s41_s6 = int_to_ptr.vmem [resolvable:$true] %s40_s6 }
  0x16   :  { %s485_s9 = scalar_lea.hbm %s689_s0, 32 }
  0x17   :  { %p486_p8 = scmp.ne.s32.totalorder %s689_s0, %s485_s9  ;;  %p489_p9 = scmp.lt.u32.totalorder %s485_s9, %s689_s0 }
  0x19   :  { %p491_p10 = pnand %p489_p9, %p486_p8 }
  0x1b   :  { %494 = shalt.err (!%p491_p10)
}
  0x1c   :  { %s495_s1 = scalar_lea.vmem %s20_s30, 32  ;;  %p500_p12 = scmp.lt.s32.totalorder %s20_s30, %s20_s30 }
  0x1d   :  { %p496_p11 = scmp.ne.s32.totalorder %s20_s30, %s495_s1  ;;  %p501_p13 = scmp.lt.s32.totalorder %s495_s1, %s495_s1 }
  0x1f   :  { %p502_p0 = por %p501_p13, %p500_p12 }
  0x21   :  { %p503_p1 = pnand %p502_p0, %p496_p11 }
  0x23   :  { %506 = shalt.err (!%p503_p1)
}
  0x24   :  { %22 = dma.hbm_to_vmem [thread:$0]  %s689_s0, 32, %s20_s30, [#allocation3]  }
  0x25   :  { %s507_s18 = scalar_lea.hbm %s691_s2, 256 }
  0x26   :  { %p508_p2 = scmp.ne.s32.totalorder %s691_s2, %s507_s18  ;;  %p511_p3 = scmp.lt.u32.totalorder %s507_s18, %s691_s2 }
  0x28   :  { %p513_p4 = pnand %p511_p3, %p508_p2 }
  0x2a   :  { %516 = shalt.err (!%p513_p4)
}
  0x2b   :  { %s517_s23 = scalar_lea.vmem %s41_s6, 256  ;;  %p522_p6 = scmp.lt.s32.totalorder %s41_s6, %s41_s6 }
  0x2c   :  { %p518_p5 = scmp.ne.s32.totalorder %s41_s6, %s517_s23  ;;  %p523_p7 = scmp.lt.s32.totalorder %s517_s23, %s517_s23 }
  0x2e   :  { %p524_p8 = por %p523_p7, %p522_p6 }
  0x30   :  { %p525_p9 = pnand %p524_p8, %p518_p5 }
  0x32   :  { %528 = shalt.err (!%p525_p9)
}
  0x33   :  { %46 = dma.hbm_to_vmem [thread:$0]  %s691_s2, 256, %s41_s6, [#allocation6], %s582_s25, %s582_s25, %s583_s26  }
  0x34   :  { %s586_s27 = smov [#allocation8]   ;;  %s529_s5 = scalar_lea.hbm %s692_s3, 2048 }
  0x35   :  { %s52_s28 = sshll.u32 %s586_s27, 4  ;;  %p530_p10 = scmp.ne.s32.totalorder %s692_s3, %s529_s5  ;;  %s53_s28 = int_to_ptr.vmem [resolvable:$true] %s52_s28 }
  0x36   :  { %p533_p11 = scmp.lt.u32.totalorder %s529_s5, %s692_s3 }
  0x38   :  { %p535_p12 = pnand %p533_p11, %p530_p10 }
  0x3a   :  { %538 = shalt.err (!%p535_p12)
}
  0x3b   :  { %s539_s11 = scalar_lea.vmem %s53_s28, 2048  ;;  %p544_p0 = scmp.lt.s32.totalorder %s53_s28, %s53_s28 }
  0x3c   :  { %p540_p13 = scmp.ne.s32.totalorder %s53_s28, %s539_s11  ;;  %p545_p1 = scmp.lt.s32.totalorder %s539_s11, %s539_s11 }
  0x3e   :  { %p546_p2 = por %p545_p1, %p544_p0 }
  0x40   :  { %p547_p3 = pnand %p546_p2, %p540_p13 }
  0x42   :  { %550 = shalt.err (!%p547_p3)
}
  0x43   :  { %s587_s2 = smov 128   ;;  %s588_s25 = smov 8  }
  0x44   :  { %58 = dma.hbm_to_vmem [thread:$0]  %s692_s3, 2048, %s53_s28, [#allocation9], %s587_s2, %s587_s2, %s588_s25  }
  0x45   :  { %573 = dma.done.wait [#allocation3], 32  }
  0x46   :  { %574 = vsyncadd [#allocation3], 4294967264 }
  0x47   :  { %575 = dma.done.wait [#allocation6], 512  }
  0x48   :  { %576 = vsyncadd [#allocation6], 4294966784 }
  0x49   :  { %577 = dma.done.wait [#allocation9], 2048  }
  0x4a   :  { %578 = vsyncadd [#allocation9], 4294965248  ;;  %v589_v0 = vmov 0.0   ;;  %vm590_vm0 = vmmov 0   ;;  %v433_v1 = vld [vmem:[#allocation5] sm:$0xff]   ;;  %v434_v2 = vld [vmem:[#allocation5 + $0x8] sm:$0xff]   ;;  %v344_v40 = vlaneseq }
  0x4b   :  { %404 = vmatprep.subr.bf16.mxu1 %v589_v0  ;;  %408 = vmatprep.mubr.msk.bf16.mxu1 %vm590_vm0, %v589_v0  ;;  %v72_v3 = vld [vmem:[#allocation2] sm:$0x3]  ;;  %v435_v4 = vld [vmem:[#allocation7] sm:$0xff]   ;;  %v437_v6 = vld [vmem:[#allocation8 + $0x4] ss:$8 sps:$4 sm:$0xff]   ;;  %vm112_vm1 = vcmask 261120  }
  0x4c   :  { %405 = vmatpush3.bf16.msra.mxu1 %v433_v1  ;;  %v97_v5 = vpack.c.bf16 %v72_v3, %v72_v3  ;;  %v439_v7 = vld [vmem:[#allocation8] ss:$8 sps:$4 sm:$0xff]   ;;  %v440_v8 = vld [vmem:[#allocation8 + $0x14] ss:$8 sps:$4 sm:$0xff]   ;;  %v442_v9 = vld [vmem:[#allocation8 + $0x10] ss:$8 sps:$4 sm:$0xff]   ;;  %295 = vmatprep.subr.bf16.mxu0 %v437_v6  ;;  %v98_v11 = vmul.f32 %v72_v3, %v72_v3 }
  0x4d   :  { %406 = vmatprep.subr.bf16.mxu1 %v589_v0  ;;  %v436_v10 = vld [vmem:[#allocation7 + $0x8] sm:$0xff]   ;;  %296 = vmatpush1.bf16.msra.mxu0 %v439_v7  ;;  %v443_v13 = vld [vmem:[#allocation8 + $0x24] ss:$8 sps:$4 sm:$0xff]   ;;  %v445_v14 = vld [vmem:[#allocation8 + $0x20] ss:$8 sps:$4 sm:$0xff]   ;;  %v591_v22 = vmov 0  }
  0x4e   :  { %297 = vmatprep.subr.bf16.mxu0 %v440_v8  ;;  %v99_v12 = vpack.c.bf16 %v98_v11, %v98_v11  ;;  %v446_v15 = vld [vmem:[#allocation8 + $0x34] ss:$8 sps:$4 sm:$0xff]   ;;  %v448_v16 = vld [vmem:[#allocation8 + $0x30] ss:$8 sps:$4 sm:$0xff]   ;;  %v449_v17 = vld [vmem:[#allocation8 + $0x44] ss:$8 sps:$4 sm:$0xff]   ;;  %327 = vmatprep.mubr.bf16.mxu0 %v591_v22 }
  0x4f   :  { %v451_v18 = vld [vmem:[#allocation8 + $0x40] ss:$8 sps:$4 sm:$0xff]   ;;  %v452_v19 = vld [vmem:[#allocation8 + $0x54] ss:$8 sps:$4 sm:$0xff]   ;;  %v454_v20 = vld [vmem:[#allocation8 + $0x50] ss:$8 sps:$4 sm:$0xff]  }
  0x50   :  { %407 = vmatpush3.bf16.msra.mxu1 %v434_v2  ;;  %v455_v21 = vld [vmem:[#allocation8 + $0x64] ss:$8 sps:$4 sm:$0xff]   ;;  %v457_v23 = vld [vmem:[#allocation8 + $0x60] ss:$8 sps:$4 sm:$0xff]   ;;  %v458_v24 = vld [vmem:[#allocation8 + $0x74] ss:$8 sps:$4 sm:$0xff]  }
  0x51   :  { %412 = vmatprep.subr.bf16.mxu1 %v589_v0  ;;  %298 = vmatpush1.bf16.msra.mxu0 %v442_v9  ;;  %v460_v25 = vld [vmem:[#allocation8 + $0x70] ss:$8 sps:$4 sm:$0xff]   ;;  %v592_v38 = vmov 1966171168   ;;  %v345_v42 = vshrl.u32 %v344_v40, 7  ;;  %s593_s3 = smov [#allocation10]  }
  0x52   :  { %299 = vmatprep.subr.bf16.mxu0 %v443_v13  ;;  %v342_v39 = vunpack.c.l.s4 %v592_v38  ;;  %s363_s12 = sshll.u32 %s593_s3, 4  ;;  %s364_s12 = int_to_ptr.vmem [resolvable:$true] %s363_s12 }
  0x53   :  { %409 = vmatmul.mubr.msk.bf16.vlgmr.msra.gmra.mrb[0].mxu1 %vm112_vm1, %v97_v5  ;;  %s551_s13 = scalar_lea.vmem %s364_s12, 32  ;;  %p556_p5 = scmp.lt.s32.totalorder %s364_s12, %s364_s12 }
  0x54   :  { %413 = vmatpush3.bf16.msra.mxu1 %v435_v4  ;;  %416 = vmatprep.mubr.msk.bf16.mxu1 %vm590_vm0, %v589_v0  ;;  %v343_v41 = vunpack.c.0.s8 %v342_v39  ;;  %p552_p4 = scmp.ne.s32.totalorder %s364_s12, %s551_s13  ;;  %p557_p6 = scmp.lt.s32.totalorder %s551_s13, %s551_s13 }
  0x55   :  { %414 = vmatprep.subr.bf16.mxu1 %v589_v0  ;;  %300 = vmatpush1.bf16.msra.mxu0 %v445_v14 }
  0x56   :  { %301 = vmatprep.subr.bf16.mxu0 %v446_v15  ;;  %v346_v44 = vsub.s32 %v343_v41, %v345_v42  ;;  %p558_p7 = por %p557_p6, %p556_p5 }
  0x58   :  { %415 = vmatpush3.bf16.msra.mxu1 %v436_v10  ;;  %p559_p8 = pnand %p558_p7, %p552_p4 }
  0x59   :  { %302 = vmatpush1.bf16.msra.mxu0 %v448_v16 }
  0x5a   :  { %303 = vmatprep.subr.bf16.mxu0 %v449_v17 }
  0x5b   :  { %417 = vmatmul.mubr.msk.bf16.vlgmr.msra.gmra.mrb[4].mxu1 %vm112_vm1, %v99_v12 }
  0x5d   :  { %304 = vmatpush1.bf16.msra.mxu0 %v451_v18 }
  0x5e   :  { %305 = vmatprep.subr.bf16.mxu0 %v452_v19 }
  0x61   :  { %306 = vmatpush1.bf16.msra.mxu0 %v454_v20 }
  0x62   :  { %307 = vmatprep.subr.bf16.mxu0 %v455_v21 }
  0x65   :  { %308 = vmatpush1.bf16.msra.mxu0 %v457_v23 }
  0x66   :  { %309 = vmatprep.subr.bf16.mxu0 %v458_v24 }
  0x69   :  { %310 = vmatpush1.bf16.msra.mxu0 %v460_v25 }
 0x126   :  { %v150_v26 = vpop.f32.mrb[0].mxu1 }
 0x127   :  { %v410_v27 = vpop.f32.mrb[1].mxu1 }
 0x128   :  { %v153_v28 = vpop.f32.mrb[2].mxu1 }
 0x129   :  { %v411_v29 = vpop.f32.mrb[3].mxu1 }
 0x12e   :  { %v205_v30 = vpop.f32.mrb[4].mxu1 }
 0x12f   :  { %v211_v31 = vmax.f32 %v205_v30, 1e-24  ;;  %v418_v32 = vpop.f32.mrb[5].mxu1 }
 0x130   :  { %v208_v33 = vpop.f32.mrb[6].mxu1 }
 0x131   :  { %461 = vrsqrt.f32 %v211_v31  ;;  %v419_v34 = vpop.f32.mrb[7].mxu1 }
 0x13b   :  { %v462_v35 = vpop.eup %461 }
 0x13c   :  { %v213_v36 = vmul.f32 %v462_v35, %v150_v26 }
 0x13e   :  { %v214_v37 = vpack.c.bf16 %v213_v36, %v213_v36 }
 0x140   :  { %328 = vmatmul.mubr.bf16.vlgmr.msra.gmra.mrb[0].mxu0 %v214_v37 }
 0x213   :  { %v329_v43 = vpop.f32.mrb[0].mxu0 }
 0x214   :  { %v331_v45 = vpop.f32.mrb[1].mxu0 }
 0x215   :  { %v396_v46 = vpack.c.bf16 %v331_v45, %v329_v43  ;;  %v333_v47 = vpop.f32.mrb[2].mxu0 }
 0x216   :  { %v334_v48 = vpop.f32.mrb[3].mxu0 }
 0x217   :  { %v347_v49 = vrot.slane %v396_v46, %v346_v44 }
 0x219   :  { %397 = vst.sshfl [vmem:[#allocation10] sm:$0x5 pattern:$0x73625140] %v347_v49 }
 0x21a   :  { %562 = shalt.err (!%p559_p8)
}
 0x21b   :  { %s563_s15 = scalar_lea.hbm %s693_s4, 32 }
 0x21c   :  { %p564_p9 = scmp.ne.s32.totalorder %s693_s4, %s563_s15  ;;  %p567_p10 = scmp.lt.u32.totalorder %s563_s15, %s693_s4 }
 0x21e   :  { %p569_p11 = pnand %p567_p10, %p564_p9 }
 0x220   :  { %572 = shalt.err (!%p569_p11)
}
 0x221   :  { %366 = dma.vmem_to_hbm [thread:$0]  %s364_s12, 32, %s693_s4, [#allocation4]  }
 0x222   :  { %579 = dma.done.wait [#allocation4], 32  }
 0x223   :  { %580 = vsyncadd [#allocation4], 4294967264 }
 0x224   :  { %370 = vsyncpa [#allocation3], 1 }
 0x225   :  { %371 = vsyncpa [#allocation6], 1 }
 0x226   :  { %372 = vsyncpa [#allocation9], 1 }
 0x227   :  { %373 = vsyncpa [#allocation4], 1 }

// kernel: tpu_custom_call.1
= control target key start
LH: loop header
LB: loop body
LE: loop exit
PB: predicated region body
PF: predicated region fallthrough
CT: control target
= control target key end

     0   :  { %9 = vsyncpa [#allocation3], 0  ;;  %s689_s0 = inlined_call_operand.hbm [shape: f32[2,32], index: 0, kind: input, shape index: {}]   ;;  %s690_s1 = inlined_call_operand.hbm [shape: bf16[32,128], index: 1, kind: input, shape index: {}]   ;;  %s691_s2 = inlined_call_operand.hbm [shape: bf16[32,128], index: 2, kind: input, shape index: {}]   ;;  %s692_s3 = inlined_call_operand.hbm [shape: bf16[128,256], index: 3, kind: input, shape index: {}]   ;;  %s693_s4 = inlined_call_operand.hbm [shape: bf16[2,256], index: 4, kind: output, shape index: {}]  }
   0x1   :  { %10 = vsyncpa [#allocation6], 0 }
   0x2   :  { %11 = vsyncpa [#allocation9], 0 }
   0x3   :  { %12 = vsyncpa [#allocation4], 0  ;;  %s581_s15 = smov [#allocation5]   ;;  %s463_s19 = scalar_lea.hbm %s690_s1, 256 }
   0x4   :  { %s28_s16 = sshll.u32 %s581_s15, 4  ;;  %p464_p0 = scmp.ne.s32.totalorder %s690_s1, %s463_s19  ;;  %s29_s16 = int_to_ptr.vmem [resolvable:$true] %s28_s16 }
   0x5   :  { %p467_p1 = scmp.lt.u32.totalorder %s463_s19, %s690_s1 }
   0x7   :  { %p469_p2 = pnand %p467_p1, %p464_p0 }
   0x9   :  { %472 = shalt.err (!%p469_p2)
}
   0xa   :  { %s473_s24 = scalar_lea.vmem %s29_s16, 256  ;;  %p478_p4 = scmp.lt.s32.totalorder %s29_s16, %s29_s16 }
   0xb   :  { %p474_p3 = scmp.ne.s32.totalorder %s29_s16, %s473_s24  ;;  %p479_p5 = scmp.lt.s32.totalorder %s473_s24, %s473_s24 }
   0xd   :  { %p480_p6 = por %p479_p5, %p478_p4 }
   0xf   :  { %p481_p7 = pnand %p480_p6, %p474_p3 }
  0x11   :  { %484 = shalt.err (!%p481_p7)
}
  0x12   :  { %s582_s25 = smov 64   ;;  %s583_s26 = smov 4  }
  0x13   :  { %34 = dma.hbm_to_vmem [thread:$0]  %s690_s1, 256, %s29_s16, [#allocation6], %s582_s25, %s582_s25, %s583_s26  }
  0x14   :  { %s584_s29 = smov [#allocation2]   ;;  %s585_s5 = smov [#allocation7]  }
  0x15   :  { %s19_s30 = sshll.u32 %s584_s29, 4  ;;  %s40_s6 = sshll.u32 %s585_s5, 4  ;;  %s20_s30 = int_to_ptr.vmem [resolvable:$true] %s19_s30  ;;  %s41_s6 = int_to_ptr.vmem [resolvable:$true] %s40_s6 }
  0x16   :  { %s485_s9 = scalar_lea.hbm %s689_s0, 32 }
  0x17   :  { %p486_p8 = scmp.ne.s32.totalorder %s689_s0, %s485_s9  ;;  %p489_p9 = scmp.lt.u32.totalorder %s485_s9, %s689_s0 }
  0x19   :  { %p491_p10 = pnand %p489_p9, %p486_p8 }
  0x1b   :  { %494 = shalt.err (!%p491_p10)
}
  0x1c   :  { %s495_s1 = scalar_lea.vmem %s20_s30, 32  ;;  %p500_p12 = scmp.lt.s32.totalorder %s20_s30, %s20_s30 }
  0x1d   :  { %p496_p11 = scmp.ne.s32.totalorder %s20_s30, %s495_s1  ;;  %p501_p13 = scmp.lt.s32.totalorder %s495_s1, %s495_s1 }
  0x1f   :  { %p502_p0 = por %p501_p13, %p500_p12 }
  0x21   :  { %p503_p1 = pnand %p502_p0, %p496_p11 }
  0x23   :  { %506 = shalt.err (!%p503_p1)
}
  0x24   :  { %22 = dma.hbm_to_vmem [thread:$0]  %s689_s0, 32, %s20_s30, [#allocation3]  }
  0x25   :  { %s507_s18 = scalar_lea.hbm %s691_s2, 256 }
  0x26   :  { %p508_p2 = scmp.ne.s32.totalorder %s691_s2, %s507_s18  ;;  %p511_p3 = scmp.lt.u32.totalorder %s507_s18, %s691_s2 }
  0x28   :  { %p513_p4 = pnand %p511_p3, %p508_p2 }
  0x2a   :  { %516 = shalt.err (!%p513_p4)
}
  0x2b   :  { %s517_s23 = scalar_lea.vmem %s41_s6, 256  ;;  %p522_p6 = scmp.lt.s32.totalorder %s41_s6, %s41_s6 }
  0x2c   :  { %p518_p5 = scmp.ne.s32.totalorder %s41_s6, %s517_s23  ;;  %p523_p7 = scmp.lt.s32.totalorder %s517_s23, %s517_s23 }
  0x2e   :  { %p524_p8 = por %p523_p7, %p522_p6 }
  0x30   :  { %p525_p9 = pnand %p524_p8, %p518_p5 }
  0x32   :  { %528 = shalt.err (!%p525_p9)
}
  0x33   :  { %46 = dma.hbm_to_vmem [thread:$0]  %s691_s2, 256, %s41_s6, [#allocation6], %s582_s25, %s582_s25, %s583_s26  }
  0x34   :  { %s586_s27 = smov [#allocation8]   ;;  %s529_s5 = scalar_lea.hbm %s692_s3, 2048 }
  0x35   :  { %s52_s28 = sshll.u32 %s586_s27, 4  ;;  %p530_p10 = scmp.ne.s32.totalorder %s692_s3, %s529_s5  ;;  %s53_s28 = int_to_ptr.vmem [resolvable:$true] %s52_s28 }
  0x36   :  { %p533_p11 = scmp.lt.u32.totalorder %s529_s5, %s692_s3 }
  0x38   :  { %p535_p12 = pnand %p533_p11, %p530_p10 }
  0x3a   :  { %538 = shalt.err (!%p535_p12)
}
  0x3b   :  { %s539_s11 = scalar_lea.vmem %s53_s28, 2048  ;;  %p544_p0 = scmp.lt.s32.totalorder %s53_s28, %s53_s28 }
  0x3c   :  { %p540_p13 = scmp.ne.s32.totalorder %s53_s28, %s539_s11  ;;  %p545_p1 = scmp.lt.s32.totalorder %s539_s11, %s539_s11 }
  0x3e   :  { %p546_p2 = por %p545_p1, %p544_p0 }
  0x40   :  { %p547_p3 = pnand %p546_p2, %p540_p13 }
  0x42   :  { %550 = shalt.err (!%p547_p3)
}
  0x43   :  { %s587_s2 = smov 128   ;;  %s588_s25 = smov 8  }
  0x44   :  { %58 = dma.hbm_to_vmem [thread:$0]  %s692_s3, 2048, %s53_s28, [#allocation9], %s587_s2, %s587_s2, %s588_s25  }
  0x45   :  { %573 = dma.done.wait [#allocation3], 32  }
  0x46   :  { %574 = vsyncadd [#allocation3], 4294967264 }
  0x47   :  { %575 = dma.done.wait [#allocation6], 512  }
  0x48   :  { %576 = vsyncadd [#allocation6], 4294966784 }
  0x49   :  { %577 = dma.done.wait [#allocation9], 2048  }
  0x4a   :  { %578 = vsyncadd [#allocation9], 4294965248  ;;  %v589_v0 = vmov 0.0   ;;  %vm590_vm0 = vmmov 0   ;;  %v433_v1 = vld [vmem:[#allocation5] sm:$0xff]   ;;  %v434_v2 = vld [vmem:[#allocation5 + $0x8] sm:$0xff]   ;;  %v344_v40 = vlaneseq }
  0x4b   :  { %404 = vmatprep.subr.bf16.mxu1 %v589_v0  ;;  %408 = vmatprep.mubr.msk.bf16.mxu1 %vm590_vm0, %v589_v0  ;;  %v72_v3 = vld [vmem:[#allocation2] sm:$0x3]  ;;  %v435_v4 = vld [vmem:[#allocation7] sm:$0xff]   ;;  %v437_v6 = vld [vmem:[#allocation8 + $0x4] ss:$8 sps:$4 sm:$0xff]   ;;  %vm112_vm1 = vcmask 261120  }
  0x4c   :  { %405 = vmatpush3.bf16.msra.mxu1 %v433_v1  ;;  %v97_v5 = vpack.c.bf16 %v72_v3, %v72_v3  ;;  %v439_v7 = vld [vmem:[#allocation8] ss:$8 sps:$4 sm:$0xff]   ;;  %v440_v8 = vld [vmem:[#allocation8 + $0x14] ss:$8 sps:$4 sm:$0xff]   ;;  %v442_v9 = vld [vmem:[#allocation8 + $0x10] ss:$8 sps:$4 sm:$0xff]   ;;  %295 = vmatprep.subr.bf16.mxu0 %v437_v6  ;;  %v98_v11 = vmul.f32 %v72_v3, %v72_v3 }
  0x4d   :  { %406 = vmatprep.subr.bf16.mxu1 %v589_v0  ;;  %v436_v10 = vld [vmem:[#allocation7 + $0x8] sm:$0xff]   ;;  %296 = vmatpush1.bf16.msra.mxu0 %v439_v7  ;;  %v443_v13 = vld [vmem:[#allocation8 + $0x24] ss:$8 sps:$4 sm:$0xff]   ;;  %v445_v14 = vld [vmem:[#allocation8 + $0x20] ss:$8 sps:$4 sm:$0xff]   ;;  %v591_v22 = vmov 0  }
  0x4e   :  { %297 = vmatprep.subr.bf16.mxu0 %v440_v8  ;;  %v99_v12 = vpack.c.bf16 %v98_v11, %v98_v11  ;;  %v446_v15 = vld [vmem:[#allocation8 + $0x34] ss:$8 sps:$4 sm:$0xff]   ;;  %v448_v16 = vld [vmem:[#allocation8 + $0x30] ss:$8 sps:$4 sm:$0xff]   ;;  %v449_v17 = vld [vmem:[#allocation8 + $0x44] ss:$8 sps:$4 sm:$0xff]   ;;  %327 = vmatprep.mubr.bf16.mxu0 %v591_v22 }
  0x4f   :  { %v451_v18 = vld [vmem:[#allocation8 + $0x40] ss:$8 sps:$4 sm:$0xff]   ;;  %v452_v19 = vld [vmem:[#allocation8 + $0x54] ss:$8 sps:$4 sm:$0xff]   ;;  %v454_v20 = vld [vmem:[#allocation8 + $0x50] ss:$8 sps:$4 sm:$0xff]  }
  0x50   :  { %407 = vmatpush3.bf16.msra.mxu1 %v434_v2  ;;  %v455_v21 = vld [vmem:[#allocation8 + $0x64] ss:$8 sps:$4 sm:$0xff]   ;;  %v457_v23 = vld [vmem:[#allocation8 + $0x60] ss:$8 sps:$4 sm:$0xff]   ;;  %v458_v24 = vld [vmem:[#allocation8 + $0x74] ss:$8 sps:$4 sm:$0xff]  }
  0x51   :  { %412 = vmatprep.subr.bf16.mxu1 %v589_v0  ;;  %298 = vmatpush1.bf16.msra.mxu0 %v442_v9  ;;  %v460_v25 = vld [vmem:[#allocation8 + $0x70] ss:$8 sps:$4 sm:$0xff]   ;;  %v592_v38 = vmov 1966171168   ;;  %v345_v42 = vshrl.u32 %v344_v40, 7  ;;  %s593_s3 = smov [#allocation10]  }
  0x52   :  { %299 = vmatprep.subr.bf16.mxu0 %v443_v13  ;;  %v342_v39 = vunpack.c.l.s4 %v592_v38  ;;  %s363_s12 = sshll.u32 %s593_s3, 4  ;;  %s364_s12 = int_to_ptr.vmem [resolvable:$true] %s363_s12 }
  0x53   :  { %409 = vmatmul.mubr.msk.bf16.vlgmr.msra.gmra.mrb[0].mxu1 %vm112_vm1, %v97_v5  ;;  %s551_s13 = scalar_lea.vmem %s364_s12, 32  ;;  %p556_p5 = scmp.lt.s32.totalorder %s364_s12, %s364_s12 }
  0x54   :  { %413 = vmatpush3.bf16.msra.mxu1 %v435_v4  ;;  %416 = vmatprep.mubr.msk.bf16.mxu1 %vm590_vm0, %v589_v0  ;;  %v343_v41 = vunpack.c.0.s8 %v342_v39  ;;  %p552_p4 = scmp.ne.s32.totalorder %s364_s12, %s551_s13  ;;  %p557_p6 = scmp.lt.s32.totalorder %s551_s13, %s551_s13 }
  0x55   :  { %414 = vmatprep.subr.bf16.mxu1 %v589_v0  ;;  %300 = vmatpush1.bf16.msra.mxu0 %v445_v14 }
  0x56   :  { %301 = vmatprep.subr.bf16.mxu0 %v446_v15  ;;  %v346_v44 = vsub.s32 %v343_v41, %v345_v42  ;;  %p558_p7 = por %p557_p6, %p556_p5 }
  0x58   :  { %415 = vmatpush3.bf16.msra.mxu1 %v436_v10  ;;  %p559_p8 = pnand %p558_p7, %p552_p4 }
  0x59   :  { %302 = vmatpush1.bf16.msra.mxu0 %v448_v16 }
  0x5a   :  { %303 = vmatprep.subr.bf16.mxu0 %v449_v17 }
  0x5b   :  { %417 = vmatmul.mubr.msk.bf16.vlgmr.msra.gmra.mrb[4].mxu1 %vm112_vm1, %v99_v12 }
  0x5d   :  { %304 = vmatpush1.bf16.msra.mxu0 %v451_v18 }
  0x5e   :  { %305 = vmatprep.subr.bf16.mxu0 %v452_v19 }
  0x61   :  { %306 = vmatpush1.bf16.msra.mxu0 %v454_v20 }
  0x62   :  { %307 = vmatprep.subr.bf16.mxu0 %v455_v21 }
  0x65   :  { %308 = vmatpush1.bf16.msra.mxu0 %v457_v23 }
  0x66   :  { %309 = vmatprep.subr.bf16.mxu0 %v458_v24 }
  0x69   :  { %310 = vmatpush1.bf16.msra.mxu0 %v460_v25 }
 0x126   :  { %v150_v26 = vpop.f32.mrb[0].mxu1 }
 0x127   :  { %v410_v27 = vpop.f32.mrb[1].mxu1 }
 0x128   :  { %v153_v28 = vpop.f32.mrb[2].mxu1 }
 0x129   :  { %v411_v29 = vpop.f32.mrb[3].mxu1 }
 0x12e   :  { %v205_v30 = vpop.f32.mrb[4].mxu1 }
 0x12f   :  { %v211_v31 = vmax.f32 %v205_v30, 1e-24  ;;  %v418_v32 = vpop.f32.mrb[5].mxu1 }
 0x130   :  { %v208_v33 = vpop.f32.mrb[6].mxu1 }
 0x131   :  { %461 = vrsqrt.f32 %v211_v31  ;;  %v419_v34 = vpop.f32.mrb[7].mxu1 }
 0x13b   :  { %v462_v35 = vpop.eup %461 }
 0x13c   :  { %v213_v36 = vmul.f32 %v462_v35, %v150_v26 }
 0x13e   :  { %v214_v37 = vpack.c.bf16 %v213_v36, %v213_v36 }
 0x140   :  { %328 = vmatmul.mubr.bf16.vlgmr.msra.gmra.mrb[0].mxu0 %v214_v37 }
 0x213   :  { %v329_v43 = vpop.f32.mrb[0].mxu0 }
 0x214   :  { %v331_v45 = vpop.f32.mrb[1].mxu0 }
 0x215   :  { %v396_v46 = vpack.c.bf16 %v331_v45, %v329_v43  ;;  %v333_v47 = vpop.f32.mrb[2].mxu0 }
 0x216   :  { %v334_v48 = vpop.f32.mrb[3].mxu0 }
 0x217   :  { %v347_v49 = vrot.slane %v396_v46, %v346_v44 }
 0x219   :  { %397 = vst.sshfl [vmem:[#allocation10] sm:$0x5 pattern:$0x73625140] %v347_v49 }
 0x21a   :  { %562 = shalt.err (!%p559_p8)
}
 0x21b   :  { %s563_s15 = scalar_lea.hbm %s693_s4, 32 }
 0x21c   :  { %p564_p9 = scmp.ne.s32.totalorder %s693_s4, %s563_s15  ;;  %p567_p10 = scmp.lt.u32.totalorder %s563_s15, %s693_s4 }
 0x21e   :  { %p569_p11 = pnand %p567_p10, %p564_p9 }
 0x220   :  { %572 = shalt.err (!%p569_p11)
}
 0x221   :  { %366 = dma.vmem_to_hbm [thread:$0]  %s364_s12, 32, %s693_s4, [#allocation4]  }
 0x222   :  { %579 = dma.done.wait [#allocation4], 32  }
 0x223   :  { %580 = vsyncadd [#allocation4], 4294967264 }
 0x224   :  { %370 = vsyncpa [#allocation3], 1 }
 0x225   :  { %371 = vsyncpa [#allocation6], 1 }
 0x226   :  { %372 = vsyncpa [#allocation9], 1 }
 0x227   :  { %373 = vsyncpa [#allocation4], 1 }

</bundles_post_ra>
